<compile_context>
chip_gen: v7x
topology: tpu7x:2x2x1
jax: 0.10.0
libtpu: 0.0.40
codegen_flags: <defaults>
</compile_context>

<pallas_src>
import functools

import jax
import jax.numpy as jnp
from jax.experimental import pallas as pl
from jax.experimental.pallas import tpu as pltpu

_LANE = 128


def _round_up(x, m):
    return ((x + m - 1) // m) * m


def _vmem_limit_bytes():
    """Generation-aware scoped-VMEM budget: 7/8 of physical VMEM capacity."""
    cap = 64 * 1024 * 1024  # conservative fallback = v7x physical VMEM
    try:
        cap = int(pltpu.get_tpu_info().vmem_capacity_bytes)
    except Exception:
        pass
    return (cap * 7) // 8


def _pick_tile(n_pad, cap):
    """Largest multiple of 128 that divides n_pad exactly and is <= cap."""
    m = n_pad // _LANE
    best = _LANE
    for d in range(1, m + 1):
        if m % d == 0 and d * _LANE <= cap:
            best = d * _LANE
    return best


def _vmem_estimate(n_pad, f_in_pad, f_out_pad, tm, tk):
    """Conservative VMEM estimate (assume double-buffering on every operand)."""
    a_tiles = 2 * tm * tk * 2                # bf16 A_hat tile stream
    h_res = 2 * n_pad * f_in_pad * 4         # resident f32 h
    w_res = 2 * f_in_pad * f_out_pad * 2     # resident bf16 W
    b_res = 2 * f_out_pad * 4                # bias row
    out_tiles = 2 * tm * f_out_pad * 4       # f32 output/accumulator tile
    return a_tiles + h_res + w_res + b_res + out_tiles


# --------------------------------------------------------------------------
# Fused kernel:  out[i-tile] = ReLU( sum_k A[i,k-tile] @ (h[k-tile] @ W) + b )
# --------------------------------------------------------------------------
def _gcn_fused_kernel(h_ref, w_ref, a_ref, b_ref, o_ref):
    k = pl.program_id(1)
    tk = a_ref.shape[1]

    @pl.when(k == 0)
    def _init():
        o_ref[...] = jnp.zeros_like(o_ref)

    # XW k-tile recomputed on the fly from VMEM-resident h and W: the
    # intermediate never touches HBM; the extra MXU work (~f_in_pad/tm of the
    # main matmul) is free filler in this HBM-bound kernel.
    row0 = pl.multiple_of(k * tk, _LANE)
    h_tile = h_ref[pl.ds(row0, tk), :].astype(jnp.bfloat16)
    xw_tile = jnp.dot(
        h_tile, w_ref[...], preferred_element_type=jnp.float32
    ).astype(jnp.bfloat16)

    # Accumulate directly into the f32 output block (resident across k).
    o_ref[...] += jnp.dot(a_ref[...], xw_tile, preferred_element_type=jnp.float32)

    @pl.when(k == pl.num_programs(1) - 1)
    def _finalize():
        o_ref[...] = jnp.maximum(o_ref[...] + b_ref[...], 0.0)


def _fused_gcn(h_pad, a_bf, w_bf, b_pad, *, tm, tk, vmem_limit):
    n_pad, f_in_pad = h_pad.shape
    f_out_pad = w_bf.shape[1]
    cost = pl.CostEstimate(
        flops=2 * n_pad * n_pad * f_out_pad
        + 2 * (n_pad // tm) * n_pad * f_in_pad * f_out_pad,
        transcendentals=0,
        bytes_accessed=(
            a_bf.size * 2
            + h_pad.size * 4
            + w_bf.size * 2
            + b_pad.size * 4
            + n_pad * f_out_pad * 4
        ),
    )
    return pl.pallas_call(
        _gcn_fused_kernel,
        out_shape=jax.ShapeDtypeStruct((n_pad, f_out_pad), jnp.float32),
        grid_spec=pltpu.PrefetchScalarGridSpec(
            num_scalar_prefetch=0,
            grid=(n_pad // tm, n_pad // tk),
            in_specs=[
                # h and W: constant block index -> fetched once per core,
                # VMEM-resident across the whole grid.
                pl.BlockSpec((n_pad, f_in_pad), lambda i, k: (0, 0)),
                pl.BlockSpec((f_in_pad, f_out_pad), lambda i, k: (0, 0)),
                # A_hat: the dominant HBM stream (streamed exactly once).
                # TODO(synk): sweep pipeline_mode=pl.Buffered(3) on this spec.
                pl.BlockSpec((tm, tk), lambda i, k: (i, k)),
                # bias row (resident).
                pl.BlockSpec((1, f_out_pad), lambda i, k: (0, 0)),
            ],
            out_specs=pl.BlockSpec((tm, f_out_pad), lambda i, k: (i, 0)),
        ),
        compiler_params=pltpu.CompilerParams(
            dimension_semantics=("parallel", "arbitrary"),
            vmem_limit_bytes=vmem_limit,
        ),
        cost_estimate=cost,
    )(h_pad, w_bf, a_bf, b_pad)


# --------------------------------------------------------------------------
# Whole GCN layer forward (pad h -> single fused Pallas kernel -> slice),
# jitted so one NFE evaluation is a single dispatched executable.
# --------------------------------------------------------------------------
@functools.partial(jax.jit, static_argnames=("tm", "tk", "f_out", "vmem_limit"))
def _gcn_forward(a_bf, w_bf, b_pad, h, *, tm, tk, f_out, vmem_limit):
    n, f_in = h.shape
    n_pad = a_bf.shape[0]
    f_in_pad = w_bf.shape[0]
    # h stays f32 here; the bf16 cast happens inside the kernel.
    h_pad = jnp.pad(h, ((0, n_pad - n), (0, f_in_pad - f_in)))
    out_pad = _fused_gcn(
        h_pad, a_bf, w_bf, b_pad, tm=tm, tk=tk, vmem_limit=vmem_limit
    )
    # TODO(synk): for ODE integration, keep the padded array as the ODE state
    # and slice only once at the very end instead of once per NFE.
    return out_pad[:n, :f_out]


class GCNLayer:
    """Representative `gnn` module passed into GNODEFunc."""

    def __init__(self, a_hat, w, b, *, tm=512, tk=1024):
        n = a_hat.shape[0]
        f_in, f_out = w.shape
        self._f_out = f_out
        self._vmem_limit = _vmem_limit_bytes()

        # Pad N only to the 128-lane boundary (no tile-sized blow-up), then
        # pick tm / tk as exact divisors of n_pad -> every row is computed and
        # A_hat padding stays minimal.
        n_pad = _round_up(n, _LANE)
        f_in_pad = _round_up(f_in, _LANE)
        f_out_pad = _round_up(f_out, _LANE)

        # >= 2 row tiles whenever possible so v7x megacore can shard them.
        tm_cap = min(tm, n_pad // 2) if n_pad >= 2 * _LANE else n_pad
        self._tm = _pick_tile(n_pad, tm_cap)
        self._tk = _pick_tile(n_pad, min(tk, n_pad))

        # Shrink tiles if the conservative VMEM estimate exceeds the budget.
        while (
            _vmem_estimate(n_pad, f_in_pad, f_out_pad, self._tm, self._tk)
            > self._vmem_limit
            and max(self._tm, self._tk) > _LANE
        ):
            if self._tk >= self._tm and self._tk > _LANE:
                self._tk = _pick_tile(n_pad, self._tk // 2)
            else:
                self._tm = _pick_tile(n_pad, self._tm // 2)
        # TODO(synk): for graphs where resident f32 h alone exceeds VMEM, fall
        # back to streaming h k-tiles (BlockSpec index_map lambda i,k: (k, 0)).

        # Precompute padded operands once; reused for every NFE evaluation.
        # A_hat stays bf16 (fine at these tolerances; switch to f32 rows if
        # accuracy drifts across many NFEs, at 2x HBM cost).
        self._a_bf = jnp.pad(
            a_hat, ((0, n_pad - n), (0, n_pad - n))
        ).astype(jnp.bfloat16)
        self._w_bf = jnp.pad(
            w, ((0, f_in_pad - f_in), (0, f_out_pad - f_out))
        ).astype(jnp.bfloat16)
        self._b_pad = jnp.pad(
            b.reshape(1, f_out).astype(jnp.float32),
            ((0, 0), (0, f_out_pad - f_out)),
        )

    def __call__(self, h):
        return _gcn_forward(
            self._a_bf, self._w_bf, self._b_pad, h,
            tm=self._tm, tk=self._tk, f_out=self._f_out,
            vmem_limit=self._vmem_limit,
        )


class GNODEFunc:
    """General GNODE function class. To be passed to an ODEBlock."""

    def __init__(self, gnn):
        self.gnn = gnn
        self.nfe = 0  # NFE counter kept host-side (stateful, not in-kernel)

    def forward(self, t, h):
        self.nfe += 1
        h = self.gnn(h)
        return h

    __call__ = forward


if __name__ == "__main__":
    key = jax.random.PRNGKey(0)
    k_adj, k_h, k_w, k_b = jax.random.split(key, 4)

    N = 64      # number of graph nodes
    F_IN = 32   # input feature dim
    F_OUT = 32  # output feature dim

    # Deterministic synthetic graph: random adjacency + self loops,
    # row-normalized (A_hat).
    adj = (jax.random.uniform(k_adj, (N, N)) < 0.2).astype(jnp.float32)
    adj = jnp.maximum(adj, adj.T) + jnp.eye(N, dtype=jnp.float32)
    deg = jnp.sum(adj, axis=1, keepdims=True)
    a_hat = adj / deg

    # Deterministic parameter init (Glorot-ish scaling).
    w = jax.random.normal(k_w, (F_IN, F_OUT), jnp.float32) * (1.0 / jnp.sqrt(F_IN))
    b = jax.random.normal(k_b, (F_OUT,), jnp.float32) * 0.01

    # Node features.
    h = jax.random.normal(k_h, (N, F_IN), jnp.float32)

    gnode = GNODEFunc(GCNLayer(a_hat, w, b))

    t = jnp.float32(0.0)  # unused by forward, kept for ODE interface parity
    out = gnode(t, h)
    out = jax.block_until_ready(out)

    # Pure-JAX references.
    ref_f32 = jnp.maximum(a_hat @ (h @ w) + b[None, :], 0.0)
    xw_bf = jnp.dot(
        h.astype(jnp.bfloat16), w.astype(jnp.bfloat16),
        preferred_element_type=jnp.float32,
    ).astype(jnp.bfloat16)
    ref_bf16 = jnp.maximum(
        jnp.dot(a_hat.astype(jnp.bfloat16), xw_bf,
                preferred_element_type=jnp.float32) + b[None, :],
        0.0,
    )

    assert out.shape == (N, F_OUT)
    assert gnode.nfe == 1
    # Kernel uses bf16 matmul operands with f32 accumulation.
    assert jnp.allclose(out, ref_bf16, atol=1e-2, rtol=1e-2)
    assert jnp.allclose(out, ref_f32, atol=3e-2, rtol=3e-2)

    print("KERNEL_OK")
</pallas_src>

<mosaic_0001>
module attributes {stable_mosaic.version = 11 : i64} {
  func.func @_gcn_fused_kernel(%arg0: i32, %arg1: i32, %arg2: memref<128x128xf32, #tpu.memory_space<vmem>>, %arg3: memref<128x128xbf16, #tpu.memory_space<vmem>>, %arg4: memref<128x128xbf16, #tpu.memory_space<vmem>>, %arg5: memref<1x128xf32, #tpu.memory_space<vmem>>, %arg6: memref<128x128xf32, #tpu.memory_space<vmem>>) attributes {dimension_semantics = [#tpu.dimension_semantics<parallel>, #tpu.dimension_semantics<arbitrary>], iteration_bounds = array<i64: 1, 1>, scalar_prefetch = 0 : i64, scratch_operands = 0 : i64, tpu.core_type = #tpu.core_type<tc>, window_params = [{pipeline_mode = #tpu.pipeline_mode<synchronous>, transform_indices = @transform_0, window_bounds = array<i64: 128, 128>}, {pipeline_mode = #tpu.pipeline_mode<synchronous>, transform_indices = @transform_1, window_bounds = array<i64: 128, 128>}, {transform_indices = @transform_2, window_bounds = array<i64: 128, 128>}, {pipeline_mode = #tpu.pipeline_mode<synchronous>, transform_indices = @transform_3, window_bounds = array<i64: 1, 128>}, {transform_indices = @transform_4, window_bounds = array<i64: 128, 128>}]} {
    %c0_i32 = arith.constant 0 : i32
    %0 = arith.cmpi eq, %arg1, %c0_i32 : i32
    %1 = arith.extui %0 : i1 to i32
    %c0_i32_0 = arith.constant 0 : i32
    %2 = arith.cmpi ne, %1, %c0_i32_0 : i32
    scf.if %2 {
      %cst_12 = arith.constant 0.000000e+00 : f32
      %19 = vector.broadcast %cst_12 : f32 to vector<128x128xf32>
      %c0_13 = arith.constant 0 : index
      %c0_14 = arith.constant 0 : index
      %20 = vector.load %arg6[%c0_13, %c0_14] : memref<128x128xf32, #tpu.memory_space<vmem>>, vector<128x128xf32>
      tpu.vector_store %arg6[%c0_13, %c0_14], %19 {strides = array<i32>} : memref<128x128xf32, #tpu.memory_space<vmem>>, vector<128x128xf32>,
    } else {
    }
    %c128_i32 = arith.constant 128 : i32
    %3 = arith.muli %arg1, %c128_i32 : i32
    %4 = tpu.assume_multiple %3, 128 : i32
    %5 = arith.index_cast %4 : i32 to index
    %c0 = arith.constant 0 : index
    %6 = vector.load %arg2[%5, %c0] : memref<128x128xf32, #tpu.memory_space<vmem>>, vector<128x128xf32>
    %7 = arith.truncf %6 : vector<128x128xf32> to vector<128x128xbf16>
    %c0_1 = arith.constant 0 : index
    %c0_2 = arith.constant 0 : index
    %8 = vector.load %arg3[%c0_1, %c0_2] : memref<128x128xbf16, #tpu.memory_space<vmem>>, vector<128x128xbf16>
    %cst = arith.constant dense<0.000000e+00> : vector<128x128xf32>
    %9 = tpu.matmul %7, %8, %cst {dimension_numbers = #tpu.dot_dimension_numbers<[1], [0], [0], [1], [0, 0, 1, 1], [], []>} : vector<128x128xbf16>, vector<128x128xbf16>, vector<128x128xf32> -> vector<128x128xf32>
    %10 = arith.truncf %9 : vector<128x128xf32> to vector<128x128xbf16>
    %c0_3 = arith.constant 0 : index
    %c0_4 = arith.constant 0 : index
    %11 = vector.load %arg6[%c0_3, %c0_4] : memref<128x128xf32, #tpu.memory_space<vmem>>, vector<128x128xf32>
    %c0_5 = arith.constant 0 : index
    %c0_6 = arith.constant 0 : index
    %12 = vector.load %arg4[%c0_5, %c0_6] : memref<128x128xbf16, #tpu.memory_space<vmem>>, vector<128x128xbf16>
    %cst_7 = arith.constant dense<0.000000e+00> : vector<128x128xf32>
    %13 = tpu.matmul %12, %10, %cst_7 {dimension_numbers = #tpu.dot_dimension_numbers<[1], [0], [0], [1], [0, 0, 1, 1], [], []>} : vector<128x128xbf16>, vector<128x128xbf16>, vector<128x128xf32> -> vector<128x128xf32>
    %14 = arith.addf %11, %13 : vector<128x128xf32>
    %c0_8 = arith.constant 0 : index
    %c0_9 = arith.constant 0 : index
    %15 = vector.load %arg6[%c0_8, %c0_9] : memref<128x128xf32, #tpu.memory_space<vmem>>, vector<128x128xf32>
    tpu.vector_store %arg6[%c0_8, %c0_9], %14 {strides = array<i32>} : memref<128x128xf32, #tpu.memory_space<vmem>>, vector<128x128xf32>,
    %c0_i32_10 = arith.constant 0 : i32
    %16 = arith.cmpi eq, %arg1, %c0_i32_10 : i32
    %17 = arith.extui %16 : i1 to i32
    %c0_i32_11 = arith.constant 0 : i32
    %18 = arith.cmpi ne, %17, %c0_i32_11 : i32
    scf.if %18 {
      %c0_12 = arith.constant 0 : index
      %c0_13 = arith.constant 0 : index
      %19 = vector.load %arg6[%c0_12, %c0_13] : memref<128x128xf32, #tpu.memory_space<vmem>>, vector<128x128xf32>
      %c0_14 = arith.constant 0 : index
      %c0_15 = arith.constant 0 : index
      %20 = vector.load %arg5[%c0_14, %c0_15] : memref<1x128xf32, #tpu.memory_space<vmem>>, vector<1x128xf32>
      %21 = vector.broadcast %20 : vector<1x128xf32> to vector<128x128xf32>
      %22 = arith.addf %19, %21 : vector<128x128xf32>
      %cst_16 = arith.constant 0.000000e+00 : f32
      %23 = vector.broadcast %cst_16 : f32 to vector<128x128xf32>
      %24 = arith.maximumf %22, %23 : vector<128x128xf32>
      %c0_17 = arith.constant 0 : index
      %c0_18 = arith.constant 0 : index
      %25 = vector.load %arg6[%c0_17, %c0_18] : memref<128x128xf32, #tpu.memory_space<vmem>>, vector<128x128xf32>
      tpu.vector_store %arg6[%c0_17, %c0_18], %24 {strides = array<i32>} : memref<128x128xf32, #tpu.memory_space<vmem>>, vector<128x128xf32>,
    } else {
    }
    return
  }
  func.func @transform_0(%arg0: i32, %arg1: i32) -> (i32, i32) {
    %c0_i32 = arith.constant 0 : i32
    %c0_i32_0 = arith.constant 0 : i32
    %c0_i32_1 = arith.constant 0 : i32
    return %c0_i32, %c0_i32_0 : i32, i32
  }
  func.func @transform_1(%arg0: i32, %arg1: i32) -> (i32, i32) {
    %c0_i32 = arith.constant 0 : i32
    %c0_i32_0 = arith.constant 0 : i32
    %c0_i32_1 = arith.constant 0 : i32
    return %c0_i32, %c0_i32_0 : i32, i32
  }
  func.func @transform_2(%arg0: i32, %arg1: i32) -> (i32, i32) {
    %c0_i32 = arith.constant 0 : i32
    return %arg0, %arg1 : i32, i32
  }
  func.func @transform_3(%arg0: i32, %arg1: i32) -> (i32, i32) {
    %c0_i32 = arith.constant 0 : i32
    %c0_i32_0 = arith.constant 0 : i32
    %c0_i32_1 = arith.constant 0 : i32
    return %c0_i32, %c0_i32_0 : i32, i32
  }
  func.func @transform_4(%arg0: i32, %arg1: i32) -> (i32, i32) {
    %c0_i32 = arith.constant 0 : i32
    %c0_i32_0 = arith.constant 0 : i32
    return %arg0, %c0_i32 : i32, i32
  }
}

</mosaic_0001>

<bundles_post_ra>
// kernel: _gcn_forward.1
= control target key start
LH: loop header
LB: loop body
LE: loop exit
PB: predicated region body
PF: predicated region fallthrough
CT: control target
= control target key end

     0   :  { %s822_s1 = inlined_call_operand.vmem [shape: bf16[128,128], index: 1, kind: input, shape index: {}]   ;;  %s823_s0 = inlined_call_operand.vmem [shape: f32[128,128], index: 0, kind: input, shape index: {}]   ;;  %s824_s2 = inlined_call_operand.vmem [shape: bf16[128,128], index: 2, kind: input, shape index: {}]   ;;  %s825_s3 = inlined_call_operand.vmem [shape: f32[1,128], index: 3, kind: input, shape index: {}]   ;;  %s826_s4 = inlined_call_operand.vmem [shape: f32[128,128], index: 4, kind: output, shape index: {}]  }
   0x1   :  { %v634_v0 = vld [vmem:[%s822_s1] sm:$0xff]   ;;  %v635_v1 = vld [vmem:[%s822_s1 + $0x8] sm:$0xff]   ;;  %v636_v2 = vld [vmem:[%s822_s1 + $0x10] sm:$0xff]  }
   0x2   :  { %569 = vmatprep.subr.bf16.mxu0 %v634_v0  ;;  %v637_v3 = vld [vmem:[%s822_s1 + $0x18] sm:$0xff]   ;;  %v40_v4 = vld [vmem:[%s823_s0] sm:$0xff]  ;;  %v41_v5 = vld [vmem:[%s823_s0 + $0x8] sm:$0xff] }
   0x3   :  { %570 = vmatpush3.bf16.msra.mxu0 %v634_v0  ;;  %v56_v6 = vpack.c.bf16 %v41_v5, %v40_v4  ;;  %v638_v7 = vld [vmem:[%s822_s1 + $0x20] sm:$0xff]   ;;  %v639_v8 = vld [vmem:[%s822_s1 + $0x28] sm:$0xff]   ;;  %v640_v9 = vld [vmem:[%s822_s1 + $0x30] sm:$0xff]  }
   0x4   :  { %571 = vmatprep.subr.bf16.mxu0 %v635_v1  ;;  %v641_v10 = vld [vmem:[%s822_s1 + $0x38] sm:$0xff]   ;;  %v42_v11 = vld [vmem:[%s823_s0 + $0x10] sm:$0xff]  ;;  %v44_v13 = vld [vmem:[%s823_s0 + $0x20] sm:$0xff] }
   0x5   :  { %585 = vmatprep.mubr.bf16.mxu0 %v56_v6  ;;  %v43_v12 = vld [vmem:[%s823_s0 + $0x18] sm:$0xff]  ;;  %v45_v14 = vld [vmem:[%s823_s0 + $0x28] sm:$0xff]  ;;  %v46_v17 = vld [vmem:[%s823_s0 + $0x30] sm:$0xff] }
   0x6   :  { %v57_v15 = vpack.c.bf16 %v43_v12, %v42_v11  ;;  %v58_v16 = vpack.c.bf16 %v45_v14, %v44_v13  ;;  %v47_v18 = vld [vmem:[%s823_s0 + $0x38] sm:$0xff]  ;;  %v48_v19 = vld [vmem:[%s823_s0 + $0x40] sm:$0xff]  ;;  %v49_v20 = vld [vmem:[%s823_s0 + $0x48] sm:$0xff] }
   0x7   :  { %572 = vmatpush3.bf16.msra.mxu0 %v635_v1  ;;  %v59_v21 = vpack.c.bf16 %v47_v18, %v46_v17  ;;  %v60_v22 = vpack.c.bf16 %v49_v20, %v48_v19  ;;  %v50_v23 = vld [vmem:[%s823_s0 + $0x50] sm:$0xff]  ;;  %v51_v24 = vld [vmem:[%s823_s0 + $0x58] sm:$0xff]  ;;  %v52_v25 = vld [vmem:[%s823_s0 + $0x60] sm:$0xff] }
   0x8   :  { %573 = vmatprep.subr.bf16.mxu0 %v636_v2  ;;  %v53_v26 = vld [vmem:[%s823_s0 + $0x68] sm:$0xff]  ;;  %v61_v27 = vpack.c.bf16 %v51_v24, %v50_v23  ;;  %v54_v29 = vld [vmem:[%s823_s0 + $0x70] sm:$0xff]  ;;  %v55_v30 = vld [vmem:[%s823_s0 + $0x78] sm:$0xff] }
   0x9   :  { %v62_v28 = vpack.c.bf16 %v53_v26, %v52_v25  ;;  %v63_v31 = vpack.c.bf16 %v55_v30, %v54_v29  ;;  %v642_v32 = vld [vmem:[%s824_s2] sm:$0xff]   ;;  %v643_v57 = vld [vmem:[%s824_s2 + $0x8] sm:$0xff]   ;;  %v644_v58 = vld [vmem:[%s824_s2 + $0x10] sm:$0xff]  }
   0xa   :  { %617 = vmatprep.mubr.bf16.mxu1 %v642_v32  ;;  %v645_v59 = vld [vmem:[%s824_s2 + $0x18] sm:$0xff]   ;;  %v646_v60 = vld [vmem:[%s824_s2 + $0x20] sm:$0xff]   ;;  %v647_v61 = vld [vmem:[%s824_s2 + $0x28] sm:$0xff]  }
   0xb   :  { %574 = vmatpush3.bf16.msra.mxu0 %v636_v2  ;;  %v648_v62 = vld [vmem:[%s824_s2 + $0x30] sm:$0xff]   ;;  %v649_v63 = vld [vmem:[%s824_s2 + $0x38] sm:$0xff]   ;;  %v536_v1 = vld [vmem:[%s825_s3] ss:$0 sm:$0xff] }
   0xc   :  { %575 = vmatprep.subr.bf16.mxu0 %v637_v3 }
   0xf   :  { %576 = vmatpush3.bf16.msra.mxu0 %v637_v3 }
  0x10   :  { %577 = vmatprep.subr.bf16.mxu0 %v638_v7 }
  0x13   :  { %578 = vmatpush3.bf16.msra.mxu0 %v638_v7 }
  0x14   :  { %579 = vmatprep.subr.bf16.mxu0 %v639_v8 }
  0x17   :  { %580 = vmatpush3.bf16.msra.mxu0 %v639_v8 }
  0x18   :  { %581 = vmatprep.subr.bf16.mxu0 %v640_v9 }
  0x1b   :  { %582 = vmatpush3.bf16.msra.mxu0 %v640_v9 }
  0x1c   :  { %583 = vmatprep.subr.bf16.mxu0 %v641_v10 }
  0x1f   :  { %584 = vmatpush3.bf16.msra.mxu0 %v641_v10 }
  0x22   :  { %586 = vmatmul.mubr.bf16.vlgmr.msra.gmra.mrb[0].mxu0 %v57_v15 }
  0x23   :  { %589 = vmatprep.mubr.bf16.mxu0 %v58_v16 }
  0x2a   :  { %590 = vmatmul.mubr.bf16.gmra.mrb[4].mxu0 %v59_v21 }
  0x2b   :  { %593 = vmatprep.mubr.bf16.mxu0 %v60_v22 }
  0x32   :  { %594 = vmatmul.mubr.bf16.gmra.mrb[8].mxu0 %v61_v27 }
  0x33   :  { %597 = vmatprep.mubr.bf16.mxu0 %v62_v28 }
  0x3a   :  { %598 = vmatmul.mubr.bf16.gmra.mrb[12].mxu0 %v63_v31 }
  0xf5   :  { %v587_v33 = vpop.f32.mrb[0].mxu0 }
  0xf6   :  { %v162_v34 = vpop.f32.mrb[1].mxu0 }
  0xf7   :  { %v588_v35 = vpop.f32.mrb[2].mxu0 }
  0xf8   :  { %v226_v36 = vpack.c.bf16 %v588_v35, %v587_v33  ;;  %v165_v37 = vpop.f32.mrb[3].mxu0 }
  0xf9   :  { %v225_v38 = vpack.c.bf16 %v165_v37, %v162_v34 }
  0xfb   :  { %601 = vmatprep.subr.bf16.mxu1 %v225_v38 }
  0xfc   :  { %602 = vmatpush3.bf16.msra.mxu1 %v225_v38 }
  0xfd   :  { %v591_v39 = vpop.f32.mrb[4].mxu0  ;;  %603 = vmatprep.subr.bf16.mxu1 %v226_v36 }
  0xfe   :  { %v178_v40 = vpop.f32.mrb[5].mxu0 }
  0xff   :  { %v592_v41 = vpop.f32.mrb[6].mxu0 }
 0x100   :  { %v228_v42 = vpack.c.bf16 %v592_v41, %v591_v39  ;;  %v181_v43 = vpop.f32.mrb[7].mxu0  ;;  %604 = vmatpush3.bf16.msra.mxu1 %v226_v36 }
 0x101   :  { %v227_v44 = vpack.c.bf16 %v181_v43, %v178_v40 }
 0x103   :  { %605 = vmatprep.subr.bf16.mxu1 %v227_v44 }
 0x104   :  { %606 = vmatpush3.bf16.msra.mxu1 %v227_v44 }
 0x105   :  { %v595_v45 = vpop.f32.mrb[8].mxu0  ;;  %607 = vmatprep.subr.bf16.mxu1 %v228_v42 }
 0x106   :  { %v194_v46 = vpop.f32.mrb[9].mxu0 }
 0x107   :  { %v596_v47 = vpop.f32.mrb[10].mxu0 }
 0x108   :  { %v230_v48 = vpack.c.bf16 %v596_v47, %v595_v45  ;;  %v197_v49 = vpop.f32.mrb[11].mxu0  ;;  %608 = vmatpush3.bf16.msra.mxu1 %v228_v42 }
 0x109   :  { %v229_v50 = vpack.c.bf16 %v197_v49, %v194_v46 }
 0x10b   :  { %609 = vmatprep.subr.bf16.mxu1 %v229_v50 }
 0x10c   :  { %610 = vmatpush3.bf16.msra.mxu1 %v229_v50 }
 0x10d   :  { %v599_v51 = vpop.f32.mrb[12].mxu0  ;;  %611 = vmatprep.subr.bf16.mxu1 %v230_v48 }
 0x10e   :  { %v210_v52 = vpop.f32.mrb[13].mxu0 }
 0x10f   :  { %v600_v53 = vpop.f32.mrb[14].mxu0 }
 0x110   :  { %v232_v54 = vpack.c.bf16 %v600_v53, %v599_v51  ;;  %v213_v55 = vpop.f32.mrb[15].mxu0  ;;  %612 = vmatpush3.bf16.msra.mxu1 %v230_v48 }
 0x111   :  { %v231_v56 = vpack.c.bf16 %v213_v55, %v210_v52 }
 0x113   :  { %613 = vmatprep.subr.bf16.mxu1 %v231_v56 }
 0x114   :  { %614 = vmatpush3.bf16.msra.mxu1 %v231_v56 }
 0x115   :  { %615 = vmatprep.subr.bf16.mxu1 %v232_v54 }
 0x118   :  { %616 = vmatpush3.bf16.msra.mxu1 %v232_v54 }
 0x11b   :  { %618 = vmatmul.mubr.bf16.vlgmr.msra.gmra.mrb[0].mxu1 %v643_v57 }
 0x11c   :  { %621 = vmatprep.mubr.bf16.mxu1 %v644_v58 }
 0x123   :  { %622 = vmatmul.mubr.bf16.gmra.mrb[4].mxu1 %v645_v59 }
 0x124   :  { %625 = vmatprep.mubr.bf16.mxu1 %v646_v60 }
 0x12b   :  { %626 = vmatmul.mubr.bf16.gmra.mrb[8].mxu1 %v647_v61 }
 0x12c   :  { %629 = vmatprep.mubr.bf16.mxu1 %v648_v62 }
 0x133   :  { %630 = vmatmul.mubr.bf16.gmra.mrb[12].mxu1 %v649_v63 }
 0x1ee   :  { %v619_v0 = vpop.f32.mrb[0].mxu1 }
 0x1ef   :  { %v347_v2 = vpop.f32.mrb[1].mxu1  ;;  %v470_v4 = vadd.f32 %v619_v0, %v536_v1 }
 0x1f0   :  { %v620_v3 = vpop.f32.mrb[2].mxu1  ;;  %v468_v6 = vadd.f32 %v536_v1, %v347_v2 }
 0x1f1   :  { %v350_v5 = vpop.f32.mrb[3].mxu1  ;;  %v486_v7 = vmax.f32 %v470_v4, 0.0  ;;  %v471_v8 = vadd.f32 %v620_v3, %v536_v1 }
 0x1f2   :  { %v484_v9 = vmax.f32 %v468_v6, 0.0  ;;  %v469_v10 = vadd.f32 %v536_v1, %v350_v5 }
 0x1f3   :  { %502 = vst [vmem:[%s826_s4 + $0x10] sm:$0xff] %v486_v7  ;;  %v487_v11 = vmax.f32 %v471_v8, 0.0 }
 0x1f4   :  { %500 = vst [vmem:[%s826_s4] sm:$0xff] %v484_v9  ;;  %v485_v12 = vmax.f32 %v469_v10, 0.0 }
 0x1f5   :  { %503 = vst [vmem:[%s826_s4 + $0x18] sm:$0xff] %v487_v11 }
 0x1f6   :  { %v623_v13 = vpop.f32.mrb[4].mxu1  ;;  %501 = vst [vmem:[%s826_s4 + $0x8] sm:$0xff] %v485_v12 }
 0x1f7   :  { %v363_v14 = vpop.f32.mrb[5].mxu1  ;;  %v474_v16 = vadd.f32 %v623_v13, %v536_v1 }
 0x1f8   :  { %v624_v15 = vpop.f32.mrb[6].mxu1  ;;  %v472_v18 = vadd.f32 %v536_v1, %v363_v14 }
 0x1f9   :  { %v366_v17 = vpop.f32.mrb[7].mxu1  ;;  %v490_v19 = vmax.f32 %v474_v16, 0.0  ;;  %v475_v20 = vadd.f32 %v624_v15, %v536_v1 }
 0x1fa   :  { %v488_v21 = vmax.f32 %v472_v18, 0.0  ;;  %v473_v22 = vadd.f32 %v536_v1, %v366_v17 }
 0x1fb   :  { %506 = vst [vmem:[%s826_s4 + $0x30] sm:$0xff] %v490_v19  ;;  %v491_v23 = vmax.f32 %v475_v20, 0.0 }
 0x1fc   :  { %504 = vst [vmem:[%s826_s4 + $0x20] sm:$0xff] %v488_v21  ;;  %v489_v24 = vmax.f32 %v473_v22, 0.0 }
 0x1fd   :  { %507 = vst [vmem:[%s826_s4 + $0x38] sm:$0xff] %v491_v23 }
 0x1fe   :  { %v627_v25 = vpop.f32.mrb[8].mxu1  ;;  %505 = vst [vmem:[%s826_s4 + $0x28] sm:$0xff] %v489_v24 }
 0x1ff   :  { %v379_v26 = vpop.f32.mrb[9].mxu1  ;;  %v478_v28 = vadd.f32 %v627_v25, %v536_v1 }
 0x200   :  { %v628_v27 = vpop.f32.mrb[10].mxu1  ;;  %v476_v30 = vadd.f32 %v536_v1, %v379_v26 }
 0x201   :  { %v382_v29 = vpop.f32.mrb[11].mxu1  ;;  %v494_v31 = vmax.f32 %v478_v28, 0.0  ;;  %v479_v32 = vadd.f32 %v628_v27, %v536_v1 }
 0x202   :  { %v492_v33 = vmax.f32 %v476_v30, 0.0  ;;  %v477_v34 = vadd.f32 %v536_v1, %v382_v29 }
 0x203   :  { %510 = vst [vmem:[%s826_s4 + $0x50] sm:$0xff] %v494_v31  ;;  %v495_v35 = vmax.f32 %v479_v32, 0.0 }
 0x204   :  { %508 = vst [vmem:[%s826_s4 + $0x40] sm:$0xff] %v492_v33  ;;  %v493_v36 = vmax.f32 %v477_v34, 0.0 }
 0x205   :  { %511 = vst [vmem:[%s826_s4 + $0x58] sm:$0xff] %v495_v35 }
 0x206   :  { %v631_v37 = vpop.f32.mrb[12].mxu1  ;;  %509 = vst [vmem:[%s826_s4 + $0x48] sm:$0xff] %v493_v36 }
 0x207   :  { %v395_v38 = vpop.f32.mrb[13].mxu1  ;;  %v482_v40 = vadd.f32 %v631_v37, %v536_v1 }
 0x208   :  { %v632_v39 = vpop.f32.mrb[14].mxu1  ;;  %v480_v42 = vadd.f32 %v536_v1, %v395_v38 }
 0x209   :  { %v398_v41 = vpop.f32.mrb[15].mxu1  ;;  %v498_v43 = vmax.f32 %v482_v40, 0.0  ;;  %v483_v44 = vadd.f32 %v632_v39, %v536_v1 }
 0x20a   :  { %v496_v45 = vmax.f32 %v480_v42, 0.0  ;;  %v481_v46 = vadd.f32 %v536_v1, %v398_v41 }
 0x20b   :  { %514 = vst [vmem:[%s826_s4 + $0x70] sm:$0xff] %v498_v43  ;;  %v499_v47 = vmax.f32 %v483_v44, 0.0 }
 0x20c   :  { %512 = vst [vmem:[%s826_s4 + $0x60] sm:$0xff] %v496_v45  ;;  %v497_v48 = vmax.f32 %v481_v46, 0.0 }
 0x20d   :  { %515 = vst [vmem:[%s826_s4 + $0x78] sm:$0xff] %v499_v47 }
 0x20e   :  { %513 = vst [vmem:[%s826_s4 + $0x68] sm:$0xff] %v497_v48 }

</bundles_post_ra>
